<compile_context>
chip_gen: v6e
topology: v6e:2x2x1
jax: 0.10.0
libtpu: 0.0.40
codegen_flags: <defaults>
</compile_context>

<pallas_src>
import functools

import jax
import jax.numpy as jnp
from jax import lax
from jax.experimental import pallas as pl
from jax.experimental.pallas import tpu as pltpu


def _round_up(x, m):
    return (x + m - 1) // m * m


def _cell_seq_kernel(u_ref, int_ref, hx0_ref, ax0_ref, whh_ref,
                     hy_ref, ay_ref,
                     h_carry, a_carry,
                     *, mu_const, sig_const, inv_h, decay, gain,
                     hidden, hidden_pad, time_block):
    tb = pl.program_id(1)

    # Initialize the recurrent carries from the provided initial state at the
    # start of each batch tile's time sweep.
    @pl.when(tb == 0)
    def _init():
        h_carry[...] = hx0_ref[...]
        a_carry[...] = ax0_ref[...]

    # Recurrent weight is VMEM-resident (constant index_map); load once per
    # grid step and reuse it for every unrolled timestep below.
    whh = whh_ref[...]                                       # (Hp, Hp)

    # Mask of the true hidden lanes.  Padded lanes [H, Hp) of the carries and
    # outputs are forced to exactly zero every step (see below), so there is
    # no reliance on "garbage in padded lanes happens to be harmless".
    lane = lax.broadcasted_iota(jnp.int32, (1, hidden_pad), 1)
    true_lane = lane < hidden

    def step(t, carry):
        del carry
        u = u_ref[t]                                         # (Bt, Hp)  = x_t @ Wih^T (precomputed)
        hx = h_carry[...]                                    # (Bt, Hp)
        ax = a_carry[...]                                    # (Bt, Hp)

        # pre = x@Wih^T + hx@Whh^T.  The x-projection was hoisted out of the
        # recurrence, so the per-step MXU work is a single (Bt,Hp)x(Hp,Hp)
        # accumulating dot -- no lane-axis concat copy.
        pre = u + jnp.dot(hx.astype(whh.dtype), whh,
                          preferred_element_type=jnp.float32)

        # LayerNorm.  Padded columns of `pre` are exactly zero (zero-padded u
        # and zero weight rows/cols), so the mean over all Hp lanes scaled by
        # 1/H is exact.  Variance is two-pass on lane-masked residuals to
        # avoid the E[x^2]-mu^2 cancellation issue.
        mu = jnp.sum(pre, axis=-1, keepdims=True) * inv_h
        centered = pre - mu
        cm = jnp.where(true_lane, centered, 0.0)
        var = jnp.sum(cm * cm, axis=-1, keepdims=True) * inv_h
        sigma = jnp.sqrt(var) + 1.0e-4                       # torch: std(unbiased=False) + 1e-4
        scale = pl.reciprocal(sigma, approx=True) * sig_const  # EUP slot (otherwise idle)
        x_ln = centered * scale + mu_const

        ay = ax * decay + gain * hx                          # ax*(1-1/tau) + (b/tau)*hx
        hy = jnp.maximum(x_ln + int_ref[t] - ax, 0.0)        # ReLU
        hy = jnp.where(true_lane, hy, 0.0)                   # keep padded lanes at exactly 0

        h_carry[...] = hy
        a_carry[...] = ay
        hy_ref[t] = hy
        ay_ref[t] = ay
        return 0

    # Unrolled so the LLO scheduler can overlap the next step's loads with the
    # current step's VPU tail.
    lax.fori_loop(0, time_block, step, 0, unroll=True)


def prepare_params(weight_ih, weight_hh, b, tau_a, *, matmul_dtype=jnp.float32):
    """One-time parameter prep (hoisted out of the per-call path).

    - weight_ih is kept as its transpose (I, H) for the hoisted, full-M input
      projection done in the wrapper with XLA.
    - weight_hh is transposed and zero-padded to a lane-dense (Hp, Hp) tile
      that stays VMEM-resident inside the kernel; optionally cast to bf16
      (recommended for H >= 512, mandatory-ish on v7x for large H).
    - scalar coefficients are turned into Python floats and baked into the
      kernel as compile-time constants.
    """
    weight_ih = jnp.asarray(weight_ih, jnp.float32)
    weight_hh = jnp.asarray(weight_hh, jnp.float32)
    H, I = weight_ih.shape
    assert weight_hh.shape == (H, H)
    Hp = _round_up(H, 128)
    whh_t = jnp.zeros((Hp, Hp), jnp.float32).at[:H, :H].set(weight_hh.T)
    whh_t = whh_t.astype(matmul_dtype)

    b_f = float(jnp.asarray(b, jnp.float32).reshape(()))
    tau = float(jnp.asarray(tau_a, jnp.float32).reshape(()))

    return {
        "wih_t": weight_ih.T,            # (I, H)  hoisted x-projection weight
        "whh_t": whh_t,                  # (Hp, Hp) VMEM-resident recurrent weight
        "decay": 1.0 - 1.0 / tau,        # 1 - 1/tau_a
        "gain": b_f / tau,               # b / tau_a
        "I": I, "H": H, "Hp": Hp,
    }


def adapting_layernorm_rnn_seq(params, x_seq, internal_seq, hx0, ax0,
                               musig=(0.0, 1.0), *, time_block=8):
    """Run the cell over a whole sequence inside ONE pallas_call.

    x_seq:        (T, B, I)
    internal_seq: (T, B, H)
    hx0, ax0:     (B, H)
    returns (hy_seq, ay_seq), each (T, B, H).
    """
    I, H, Hp = params["I"], params["H"], params["Hp"]
    whh_t = params["whh_t"]

    T, B, I_in = x_seq.shape
    assert I_in == I
    assert internal_seq.shape == (T, B, H)
    assert hx0.shape == (B, H) and ax0.shape == (B, H)

    f32 = jnp.float32

    # ---- hoisted, time-independent input projection (full-M matmul) -------
    u_seq = jnp.einsum("tbi,ih->tbh", x_seq.astype(f32),
                       params["wih_t"].astype(f32))           # (T, B, H)

    # ---- batch tiling: 1 tile on v5e/v6e; 2 tiles (one per TC) once the
    # padded batch is large enough that per-core M-fill is not the bottleneck.
    Bp = _round_up(B, 8)
    if Bp >= 256:
        Bp = _round_up(Bp, 16)
        Bt = Bp // 2
    else:
        Bt = Bp
    nbt = Bp // Bt

    # ---- time blocking -----------------------------------------------------
    TT = max(1, min(int(time_block), T))
    Tp = _round_up(T, TT)
    nt = Tp // TT

    # ---- lane/sublane-dense zero padding ------------------------------------
    u_p = jnp.zeros((Tp, Bp, Hp), f32).at[:T, :B, :H].set(u_seq)
    int_p = jnp.zeros((Tp, Bp, Hp), f32).at[:T, :B, :H].set(internal_seq.astype(f32))
    hx_p = jnp.zeros((Bp, Hp), f32).at[:B, :H].set(hx0.astype(f32))
    ax_p = jnp.zeros((Bp, Hp), f32).at[:B, :H].set(ax0.astype(f32))

    kernel = functools.partial(
        _cell_seq_kernel,
        mu_const=float(musig[0]), sig_const=float(musig[1]),
        inv_h=1.0 / H,
        decay=float(params["decay"]), gain=float(params["gain"]),
        hidden=H, hidden_pad=Hp, time_block=TT)

    # Explicit VMEM budget: resident weight (double-buffered by the pipeline),
    # initial states, double-buffered streams, and the carry scratch.  Capped
    # at 64 MiB so the same config stays within v7x physical VMEM.
    wbytes = Hp * Hp * jnp.dtype(whh_t.dtype).itemsize * 2
    state_bytes = (2 * Bt * Hp * 4) * 2
    stream_bytes = (4 * TT * Bt * Hp * 4) * 2     # u, internal, hy, ay
    scratch_bytes = 2 * Bt * Hp * 4
    est = wbytes + state_bytes + stream_bytes + scratch_bytes
    vmem_limit = int(min(max(2 * est, 32 * 1024 * 1024), 64 * 1024 * 1024))

    grid_spec = pltpu.PrefetchScalarGridSpec(
        num_scalar_prefetch=0,
        grid=(nbt, nt),
        in_specs=[
            pl.BlockSpec((TT, Bt, Hp), lambda bt, tb: (tb, bt, 0)),   # u_t block
            pl.BlockSpec((TT, Bt, Hp), lambda bt, tb: (tb, bt, 0)),   # internal_t block
            pl.BlockSpec((Bt, Hp), lambda bt, tb: (bt, 0)),           # hx0 (resident)
            pl.BlockSpec((Bt, Hp), lambda bt, tb: (bt, 0)),           # ax0 (resident)
            pl.BlockSpec((Hp, Hp), lambda bt, tb: (0, 0)),            # Whh^T (resident)
        ],
        out_specs=[
            pl.BlockSpec((TT, Bt, Hp), lambda bt, tb: (tb, bt, 0)),   # hy_seq
            pl.BlockSpec((TT, Bt, Hp), lambda bt, tb: (tb, bt, 0)),   # ay_seq
        ],
        scratch_shapes=[
            pltpu.VMEM((Bt, Hp), jnp.float32),    # hx carry
            pltpu.VMEM((Bt, Hp), jnp.float32),    # ax carry
        ],
    )

    hy_p, ay_p = pl.pallas_call(
        kernel,
        out_shape=(jax.ShapeDtypeStruct((Tp, Bp, Hp), f32),
                   jax.ShapeDtypeStruct((Tp, Bp, Hp), f32)),
        grid_spec=grid_spec,
        compiler_params=pltpu.CompilerParams(
            dimension_semantics=("parallel", "arbitrary"),
            vmem_limit_bytes=vmem_limit),
    )(u_p, int_p, hx_p, ax_p, whh_t)

    return hy_p[:T, :B, :H], ay_p[:T, :B, :H]


def adapting_layernorm_rnn_cell(params, inp, internal, state, musig=(0.0, 1.0)):
    """Single-step forward matching the PyTorch module: returns (hy, (hy, ay))."""
    hx, ax = state
    hy_seq, ay_seq = adapting_layernorm_rnn_seq(
        params, inp[None], internal[None], hx, ax, musig, time_block=1)
    hy, ay = hy_seq[0], ay_seq[0]
    return hy, (hy, ay)


# ----------------------------- pure-JAX reference ---------------------------

def _reference_step(inp, internal, hx, ax, weight_ih, weight_hh, b, tau_a,
                    musig=(0.0, 1.0)):
    pre = inp @ weight_ih.T + hx @ weight_hh.T
    mu = pre.mean(-1, keepdims=True)
    sigma = jnp.sqrt(((pre - mu) ** 2).mean(-1, keepdims=True)) + 1e-4
    x_ln = (pre - mu) / sigma * musig[1] + musig[0]
    ay = ax * (1.0 - 1.0 / tau_a) + b / tau_a * hx
    hy = jnp.maximum(x_ln + internal - ax, 0.0)
    return hy, ay


if __name__ == "__main__":
    B, INPUT, HIDDEN, T = 8, 16, 32, 6
    key = jax.random.PRNGKey(0)
    k = jax.random.split(key, 6)

    rootk = 1.0 / jnp.sqrt(jnp.float32(HIDDEN))
    # torch.rand(...) * 2*rootk - rootk  ->  Uniform(-rootk, rootk)
    weight_ih = jax.random.uniform(k[0], (HIDDEN, INPUT), jnp.float32,
                                   minval=-rootk, maxval=rootk)
    weight_hh = jax.random.uniform(k[1], (HIDDEN, HIDDEN), jnp.float32,
                                   minval=-rootk, maxval=rootk)
    b_param = jnp.ones((1,), jnp.float32) * 1.0
    tau_a = jnp.ones((1,), jnp.float32) * 4.0

    x_seq = jax.random.normal(k[2], (T, B, INPUT), jnp.float32)
    internal_seq = jax.random.normal(k[3], (T, B, HIDDEN), jnp.float32)
    hx0 = jax.random.normal(k[4], (B, HIDDEN), jnp.float32)
    ax0 = jax.random.normal(k[5], (B, HIDDEN), jnp.float32)

    # One-time parameter prep (transpose / pad / scalar coeffs).
    params = prepare_params(weight_ih, weight_hh, b_param, tau_a)

    # --- single step: exact semantics of the PyTorch module forward ---------
    hy, (hy2, ay) = adapting_layernorm_rnn_cell(
        params, x_seq[0], internal_seq[0], (hx0, ax0))
    jax.block_until_ready((hy, ay))
    hy_ref, ay_ref = _reference_step(x_seq[0], internal_seq[0], hx0, ax0,
                                     weight_ih, weight_hh, b_param[0], tau_a[0])
    # Tolerances carry headroom for the EUP approximate reciprocal used in the
    # LayerNorm scale (exact path available via approx=False).
    assert jnp.allclose(hy, hy_ref, atol=1e-2, rtol=1e-2)
    assert jnp.allclose(ay, ay_ref, atol=1e-2, rtol=1e-2)

    # --- whole sequence in a single kernel launch (Whh VMEM-resident,
    #     time-blocked grid, hoisted input projection) ------------------------
    hy_seq, ay_seq = adapting_layernorm_rnn_seq(params, x_seq, internal_seq,
                                                hx0, ax0, time_block=8)
    jax.block_until_ready((hy_seq, ay_seq))

    h, a = hx0, ax0
    for t in range(T):
        h_ref, a_ref = _reference_step(x_seq[t], internal_seq[t], h, a,
                                       weight_ih, weight_hh,
                                       b_param[0], tau_a[0])
        assert jnp.allclose(hy_seq[t], h_ref, atol=3e-2, rtol=3e-2), t
        assert jnp.allclose(ay_seq[t], a_ref, atol=3e-2, rtol=3e-2), t
        h, a = h_ref, a_ref

    print("KERNEL_OK")
</pallas_src>

<mosaic_0001>
module attributes {stable_mosaic.version = 11 : i64} {
  func.func @_cell_seq_kernel(%arg0: i32, %arg1: i32, %arg2: memref<1x8x128xf32, #tpu.memory_space<vmem>>, %arg3: memref<1x8x128xf32, #tpu.memory_space<vmem>>, %arg4: memref<8x128xf32, #tpu.memory_space<vmem>>, %arg5: memref<8x128xf32, #tpu.memory_space<vmem>>, %arg6: memref<128x128xf32, #tpu.memory_space<vmem>>, %arg7: memref<1x8x128xf32, #tpu.memory_space<vmem>>, %arg8: memref<1x8x128xf32, #tpu.memory_space<vmem>>, %arg9: memref<8x128xf32, #tpu.memory_space<vmem>>, %arg10: memref<8x128xf32, #tpu.memory_space<vmem>>) attributes {dimension_semantics = [#tpu.dimension_semantics<parallel>, #tpu.dimension_semantics<arbitrary>], iteration_bounds = array<i64: 1, 1>, scalar_prefetch = 0 : i64, scratch_operands = 2 : i64, tpu.core_type = #tpu.core_type<tc>, window_params = [{transform_indices = @transform_0, window_bounds = array<i64: 1, 8, 128>}, {transform_indices = @transform_1, window_bounds = array<i64: 1, 8, 128>}, {transform_indices = @transform_2, window_bounds = array<i64: 8, 128>}, {transform_indices = @transform_3, window_bounds = array<i64: 8, 128>}, {pipeline_mode = #tpu.pipeline_mode<synchronous>, transform_indices = @transform_4, window_bounds = array<i64: 128, 128>}, {transform_indices = @transform_5, window_bounds = array<i64: 1, 8, 128>}, {transform_indices = @transform_6, window_bounds = array<i64: 1, 8, 128>}]} {
    %c0_i32 = arith.constant 0 : i32
    %0 = arith.cmpi eq, %arg1, %c0_i32 : i32
    %1 = arith.extui %0 : i1 to i32
    %c0_i32_0 = arith.constant 0 : i32
    %2 = arith.cmpi ne, %1, %c0_i32_0 : i32
    scf.if %2 {
      %c0_31 = arith.constant 0 : index
      %c0_32 = arith.constant 0 : index
      %65 = vector.load %arg4[%c0_31, %c0_32] : memref<8x128xf32, #tpu.memory_space<vmem>>, vector<8x128xf32>
      %c0_33 = arith.constant 0 : index
      %c0_34 = arith.constant 0 : index
      %66 = vector.load %arg9[%c0_33, %c0_34] : memref<8x128xf32, #tpu.memory_space<vmem>>, vector<8x128xf32>
      tpu.vector_store %arg9[%c0_33, %c0_34], %65 {strides = array<i32>} : memref<8x128xf32, #tpu.memory_space<vmem>>, vector<8x128xf32>,
      %c0_35 = arith.constant 0 : index
      %c0_36 = arith.constant 0 : index
      %67 = vector.load %arg5[%c0_35, %c0_36] : memref<8x128xf32, #tpu.memory_space<vmem>>, vector<8x128xf32>
      %c0_37 = arith.constant 0 : index
      %c0_38 = arith.constant 0 : index
      %68 = vector.load %arg10[%c0_37, %c0_38] : memref<8x128xf32, #tpu.memory_space<vmem>>, vector<8x128xf32>
      tpu.vector_store %arg10[%c0_37, %c0_38], %67 {strides = array<i32>} : memref<8x128xf32, #tpu.memory_space<vmem>>, vector<8x128xf32>,
    } else {
    }
    %c0 = arith.constant 0 : index
    %c0_1 = arith.constant 0 : index
    %3 = vector.load %arg6[%c0, %c0_1] : memref<128x128xf32, #tpu.memory_space<vmem>>, vector<128x128xf32>
    %4 = tpu.iota {dimensions = array<i32: 1>} : vector<1x128xi32>
    %c32_i32 = arith.constant 32 : i32
    %5 = vector.broadcast %c32_i32 : i32 to vector<1x128xi32>
    %6 = arith.cmpi slt, %4, %5 : vector<1x128xi32>
    %c0_i32_2 = arith.constant 0 : i32
    %7 = arith.index_cast %c0_i32_2 : i32 to index
    %c0_3 = arith.constant 0 : index
    %c0_4 = arith.constant 0 : index
    %8 = vector.load %arg2[%7, %c0_3, %c0_4] : memref<1x8x128xf32, #tpu.memory_space<vmem>>, vector<1x8x128xf32>
    %9 = vector.shape_cast %8 : vector<1x8x128xf32> to vector<8x128xf32>
    %c0_5 = arith.constant 0 : index
    %c0_6 = arith.constant 0 : index
    %10 = vector.load %arg9[%c0_5, %c0_6] : memref<8x128xf32, #tpu.memory_space<vmem>>, vector<8x128xf32>
    %c0_7 = arith.constant 0 : index
    %c0_8 = arith.constant 0 : index
    %11 = vector.load %arg10[%c0_7, %c0_8] : memref<8x128xf32, #tpu.memory_space<vmem>>, vector<8x128xf32>
    %cst = arith.constant dense<0.000000e+00> : vector<8x128xf32>
    %12 = tpu.matmul %10, %3, %cst {dimension_numbers = #tpu.dot_dimension_numbers<[1], [0], [0], [1], [0, 0, 1, 1], [], []>} : vector<8x128xf32>, vector<128x128xf32>, vector<8x128xf32> -> vector<8x128xf32>
    %13 = arith.addf %9, %12 : vector<8x128xf32>
    %cst_9 = arith.constant dense<0.000000e+00> : vector<8xf32>
    %14 = vector.multi_reduction <add>, %13, %cst_9 [1] : vector<8x128xf32> to vector<8xf32>
    %15 = vector.shape_cast %14 : vector<8xf32> to vector<8x1xf32>
    %cst_10 = arith.constant 3.125000e-02 : f32
    %16 = vector.broadcast %cst_10 : f32 to vector<8x1xf32>
    %17 = arith.mulf %15, %16 : vector<8x1xf32>
    %18 = vector.broadcast %17 : vector<8x1xf32> to vector<8x128xf32>
    %19 = arith.subf %13, %18 : vector<8x128xf32>
    %cst_11 = arith.constant 0.000000e+00 : f32
    %20 = vector.shape_cast %6 : vector<1x128xi1> to vector<1x128xi1>
    %21 = vector.broadcast %20 : vector<1x128xi1> to vector<8x128xi1>
    %22 = vector.broadcast %cst_11 : f32 to vector<8x128xf32>
    %23 = arith.select %21, %19, %22 : vector<8x128xi1>, vector<8x128xf32>
    %24 = arith.mulf %23, %23 : vector<8x128xf32>
    %cst_12 = arith.constant dense<0.000000e+00> : vector<8xf32>
    %25 = vector.multi_reduction <add>, %24, %cst_12 [1] : vector<8x128xf32> to vector<8xf32>
    %26 = vector.shape_cast %25 : vector<8xf32> to vector<8x1xf32>
    %cst_13 = arith.constant 3.125000e-02 : f32
    %27 = vector.broadcast %cst_13 : f32 to vector<8x1xf32>
    %28 = arith.mulf %26, %27 : vector<8x1xf32>
    %29 = math.sqrt %28 : vector<8x1xf32>
    %cst_14 = arith.constant 9.99999974E-5 : f32
    %30 = vector.broadcast %cst_14 : f32 to vector<8x1xf32>
    %31 = arith.addf %29, %30 : vector<8x1xf32>
    %32 = tpu.reciprocal %31 {approx = true} : vector<8x1xf32> -> vector<8x1xf32>
    %cst_15 = arith.constant 1.000000e+00 : f32
    %33 = vector.broadcast %cst_15 : f32 to vector<8x1xf32>
    %34 = arith.mulf %32, %33 : vector<8x1xf32>
    %35 = vector.broadcast %34 : vector<8x1xf32> to vector<8x128xf32>
    %36 = arith.mulf %19, %35 : vector<8x128xf32>
    %cst_16 = arith.constant 0.000000e+00 : f32
    %37 = vector.broadcast %cst_16 : f32 to vector<8x128xf32>
    %38 = arith.addf %36, %37 : vector<8x128xf32>
    %cst_17 = arith.constant 7.500000e-01 : f32
    %39 = vector.broadcast %cst_17 : f32 to vector<8x128xf32>
    %40 = arith.mulf %11, %39 : vector<8x128xf32>
    %cst_18 = arith.constant 2.500000e-01 : f32
    %41 = vector.broadcast %cst_18 : f32 to vector<8x128xf32>
    %42 = arith.mulf %41, %10 : vector<8x128xf32>
    %43 = arith.addf %40, %42 : vector<8x128xf32>
    %44 = arith.index_cast %c0_i32_2 : i32 to index
    %c0_19 = arith.constant 0 : index
    %c0_20 = arith.constant 0 : index
    %45 = vector.load %arg3[%44, %c0_19, %c0_20] : memref<1x8x128xf32, #tpu.memory_space<vmem>>, vector<1x8x128xf32>
    %46 = vector.shape_cast %45 : vector<1x8x128xf32> to vector<8x128xf32>
    %47 = arith.addf %38, %46 : vector<8x128xf32>
    %48 = arith.subf %47, %11 : vector<8x128xf32>
    %cst_21 = arith.constant 0.000000e+00 : f32
    %49 = vector.broadcast %cst_21 : f32 to vector<8x128xf32>
    %50 = arith.maximumf %48, %49 : vector<8x128xf32>
    %cst_22 = arith.constant 0.000000e+00 : f32
    %51 = vector.shape_cast %6 : vector<1x128xi1> to vector<1x128xi1>
    %52 = vector.broadcast %51 : vector<1x128xi1> to vector<8x128xi1>
    %53 = vector.broadcast %cst_22 : f32 to vector<8x128xf32>
    %54 = arith.select %52, %50, %53 : vector<8x128xi1>, vector<8x128xf32>
    %c0_23 = arith.constant 0 : index
    %c0_24 = arith.constant 0 : index
    %55 = vector.load %arg9[%c0_23, %c0_24] : memref<8x128xf32, #tpu.memory_space<vmem>>, vector<8x128xf32>
    tpu.vector_store %arg9[%c0_23, %c0_24], %54 {strides = array<i32>} : memref<8x128xf32, #tpu.memory_space<vmem>>, vector<8x128xf32>,
    %c0_25 = arith.constant 0 : index
    %c0_26 = arith.constant 0 : index
    %56 = vector.load %arg10[%c0_25, %c0_26] : memref<8x128xf32, #tpu.memory_space<vmem>>, vector<8x128xf32>
    tpu.vector_store %arg10[%c0_25, %c0_26], %43 {strides = array<i32>} : memref<8x128xf32, #tpu.memory_space<vmem>>, vector<8x128xf32>,
    %57 = arith.index_cast %c0_i32_2 : i32 to index
    %c0_27 = arith.constant 0 : index
    %c0_28 = arith.constant 0 : index
    %58 = vector.load %arg7[%57, %c0_27, %c0_28] : memref<1x8x128xf32, #tpu.memory_space<vmem>>, vector<1x8x128xf32>
    %59 = vector.shape_cast %58 : vector<1x8x128xf32> to vector<8x128xf32>
    %60 = vector.shape_cast %54 : vector<8x128xf32> to vector<1x8x128xf32>
    tpu.vector_store %arg7[%57, %c0_27, %c0_28], %60 {strides = array<i32>} : memref<1x8x128xf32, #tpu.memory_space<vmem>>, vector<1x8x128xf32>,
    %61 = arith.index_cast %c0_i32_2 : i32 to index
    %c0_29 = arith.constant 0 : index
    %c0_30 = arith.constant 0 : index
    %62 = vector.load %arg8[%61, %c0_29, %c0_30] : memref<1x8x128xf32, #tpu.memory_space<vmem>>, vector<1x8x128xf32>
    %63 = vector.shape_cast %62 : vector<1x8x128xf32> to vector<8x128xf32>
    %64 = vector.shape_cast %43 : vector<8x128xf32> to vector<1x8x128xf32>
    tpu.vector_store %arg8[%61, %c0_29, %c0_30], %64 {strides = array<i32>} : memref<1x8x128xf32, #tpu.memory_space<vmem>>, vector<1x8x128xf32>,
    %c1_i32 = arith.constant 1 : i32
    return
  }
  func.func @transform_0(%arg0: i32, %arg1: i32) -> (i32, i32, i32) {
    %c0_i32 = arith.constant 0 : i32
    %c0_i32_0 = arith.constant 0 : i32
    return %arg1, %arg0, %c0_i32 : i32, i32, i32
  }
  func.func @transform_1(%arg0: i32, %arg1: i32) -> (i32, i32, i32) {
    %c0_i32 = arith.constant 0 : i32
    %c0_i32_0 = arith.constant 0 : i32
    return %arg1, %arg0, %c0_i32 : i32, i32, i32
  }
  func.func @transform_2(%arg0: i32, %arg1: i32) -> (i32, i32) {
    %c0_i32 = arith.constant 0 : i32
    %c0_i32_0 = arith.constant 0 : i32
    return %arg0, %c0_i32 : i32, i32
  }
  func.func @transform_3(%arg0: i32, %arg1: i32) -> (i32, i32) {
    %c0_i32 = arith.constant 0 : i32
    %c0_i32_0 = arith.constant 0 : i32
    return %arg0, %c0_i32 : i32, i32
  }
  func.func @transform_4(%arg0: i32, %arg1: i32) -> (i32, i32) {
    %c0_i32 = arith.constant 0 : i32
    %c0_i32_0 = arith.constant 0 : i32
    %c0_i32_1 = arith.constant 0 : i32
    return %c0_i32, %c0_i32_0 : i32, i32
  }
  func.func @transform_5(%arg0: i32, %arg1: i32) -> (i32, i32, i32) {
    %c0_i32 = arith.constant 0 : i32
    %c0_i32_0 = arith.constant 0 : i32
    return %arg1, %arg0, %c0_i32 : i32, i32, i32
  }
  func.func @transform_6(%arg0: i32, %arg1: i32) -> (i32, i32, i32) {
    %c0_i32 = arith.constant 0 : i32
    %c0_i32_0 = arith.constant 0 : i32
    return %arg1, %arg0, %c0_i32 : i32, i32, i32
  }
}

</mosaic_0001>

<bundles_post_ra>
// kernel: tpu_custom_call.1
= control target key start
LH: loop header
LB: loop body
LE: loop exit
PB: predicated region body
PF: predicated region fallthrough
CT: control target
= control target key end

     0   :  { %12 = vsyncpa [#allocation5], 0  ;;  %s536_s0 = inlined_call_operand.hbm [shape: f32[1,8,128], index: 0, kind: input, shape index: {}]   ;;  %s537_s1 = inlined_call_operand.hbm [shape: f32[1,8,128], index: 1, kind: input, shape index: {}]   ;;  %s538_s2 = inlined_call_operand.hbm [shape: f32[8,128], index: 2, kind: input, shape index: {}]   ;;  %s539_s3 = inlined_call_operand.hbm [shape: f32[8,128], index: 3, kind: input, shape index: {}]   ;;  %s540_s4 = inlined_call_operand.hbm [shape: f32[128,128], index: 4, kind: input, shape index: {}]   ;;  %s541_s5 = inlined_call_operand.hbm [shape: f32[1,8,128], index: 5, kind: output, shape index: {0}]   ;;  %s542_s6 = inlined_call_operand.hbm [shape: f32[1,8,128], index: 6, kind: output, shape index: {1}]  }
   0x1   :  { %13 = vsyncpa [#allocation8], 0 }
   0x2   :  { %14 = vsyncpa [#allocation11], 0 }
   0x3   :  { %15 = vsyncpa [#allocation6], 0 }
   0x4   :  { %16 = vsyncpa [#allocation15], 0  ;;  %s467_s21 = smov [#allocation7]   ;;  %s468_s23 = smov [#allocation10]  }
   0x5   :  { %s33_s22 = sshll.u32 %s467_s21, 4  ;;  %s53_s24 = sshll.u32 %s468_s23, 4  ;;  %s34_s22 = int_to_ptr.vmem [resolvable:$true] %s33_s22  ;;  %s54_s24 = int_to_ptr.vmem [resolvable:$true] %s53_s24 }
   0x6   :  { %s325_s25 = scalar_lea.vmem %s34_s22, 128  ;;  %p330_p1 = scmp.lt.s32.totalorder %s34_s22, %s34_s22 }
   0x7   :  { %p326_p0 = scmp.ne.s32.totalorder %s34_s22, %s325_s25  ;;  %p331_p2 = scmp.lt.s32.totalorder %s325_s25, %s325_s25 }
   0x9   :  { %p332_p3 = por %p331_p2, %p330_p1 }
   0xb   :  { %p333_p4 = pnand %p332_p3, %p326_p0 }
   0xd   :  { %336 = shalt.err (!%p333_p4)
}
   0xe   :  { %36 = dma.hbm_to_vmem [thread:$0]  %s537_s1, 128, %s34_s22, [#allocation8]  }
   0xf   :  { %s345_s28 = scalar_lea.vmem %s54_s24, 128  ;;  %p350_p6 = scmp.lt.s32.totalorder %s54_s24, %s54_s24 }
  0x10   :  { %p346_p5 = scmp.ne.s32.totalorder %s54_s24, %s345_s28  ;;  %p351_p7 = scmp.lt.s32.totalorder %s345_s28, %s345_s28 }
  0x12   :  { %p352_p8 = por %p351_p7, %p350_p6 }
  0x14   :  { %p353_p9 = pnand %p352_p8, %p346_p5 }
  0x16   :  { %356 = shalt.err (!%p353_p9)
}
  0x17   :  { %56 = dma.hbm_to_vmem [thread:$0]  %s539_s3, 128, %s54_s24, [#allocation11]  }
  0x18   :  { %s469_s7 = smov [#allocation4]   ;;  %s470_s9 = smov [#allocation9]  }
  0x19   :  { %s23_s8 = sshll.u32 %s469_s7, 4  ;;  %s43_s10 = sshll.u32 %s470_s9, 4  ;;  %s24_s8 = int_to_ptr.vmem [resolvable:$true] %s23_s8  ;;  %s44_s10 = int_to_ptr.vmem [resolvable:$true] %s43_s10 }
  0x1a   :  { %s365_s11 = scalar_lea.vmem %s24_s8, 128  ;;  %p370_p11 = scmp.lt.s32.totalorder %s24_s8, %s24_s8 }
  0x1b   :  { %p366_p10 = scmp.ne.s32.totalorder %s24_s8, %s365_s11  ;;  %p371_p12 = scmp.lt.s32.totalorder %s365_s11, %s365_s11 }
  0x1d   :  { %p372_p13 = por %p371_p12, %p370_p11 }
  0x1f   :  { %p373_p0 = pnand %p372_p13, %p366_p10 }
  0x21   :  { %376 = shalt.err (!%p373_p0)
}
  0x22   :  { %26 = dma.hbm_to_vmem [thread:$0]  %s536_s0, 128, %s24_s8, [#allocation5]  }
  0x23   :  { %s385_s13 = scalar_lea.vmem %s44_s10, 128  ;;  %p390_p2 = scmp.lt.s32.totalorder %s44_s10, %s44_s10 }
  0x24   :  { %p386_p1 = scmp.ne.s32.totalorder %s44_s10, %s385_s13  ;;  %p391_p3 = scmp.lt.s32.totalorder %s385_s13, %s385_s13 }
  0x26   :  { %p392_p4 = por %p391_p3, %p390_p2 }
  0x28   :  { %p393_p5 = pnand %p392_p4, %p386_p1 }
  0x2a   :  { %396 = shalt.err (!%p393_p5)
}
  0x2b   :  { %46 = dma.hbm_to_vmem [thread:$0]  %s538_s2, 128, %s44_s10, [#allocation8]  }
  0x2c   :  { %s471_s15 = smov [#allocation12]  }
  0x2d   :  { %s62_s16 = sshll.u32 %s471_s15, 4  ;;  %s63_s16 = int_to_ptr.vmem [resolvable:$true] %s62_s16 }
  0x2e   :  { %s405_s17 = scalar_lea.vmem %s63_s16, 2048  ;;  %p410_p7 = scmp.lt.s32.totalorder %s63_s16, %s63_s16 }
  0x2f   :  { %p406_p6 = scmp.ne.s32.totalorder %s63_s16, %s405_s17  ;;  %p411_p8 = scmp.lt.s32.totalorder %s405_s17, %s405_s17 }
  0x31   :  { %p412_p9 = por %p411_p8, %p410_p7 }
  0x33   :  { %p413_p10 = pnand %p412_p9, %p406_p6 }
  0x35   :  { %416 = shalt.err (!%p413_p10)
}
  0x36   :  { %s472_s0 = smov 128   ;;  %s473_s18 = smov 8  }
  0x37   :  { %68 = dma.hbm_to_vmem [thread:$0]  %s540_s4, 2048, %s63_s16, [#allocation11], %s472_s0, %s472_s0, %s473_s18  }
  0x38   :  { %457 = dma.done.wait [#allocation5], 128  }
  0x39   :  { %458 = vsyncadd [#allocation5], 4294967168 }
  0x3a   :  { %459 = dma.done.wait [#allocation8], 256  }
  0x3b   :  { %460 = vsyncadd [#allocation8], 4294967040 }
  0x3c   :  { %461 = dma.done.wait [#allocation11], 2176  }
  0x3d   :  { %462 = vsyncadd [#allocation11], 4294965120  ;;  %v474_v0 = vmov 0.0   ;;  %vm475_vm0 = vmmov 0   ;;  %v107_v1 = vld [vmem:[#allocation12 + $0x78] sm:$0xff]  ;;  %v106_v2 = vld [vmem:[#allocation12 + $0x70] sm:$0xff]  ;;  %v108_v22 = vlaneseq }
  0x3e   :  { %267 = vmatprep.subr.mxu0 %v474_v0  ;;  %299 = vmatprep.mubr.msk.f32.mxu0 %vm475_vm0, %v474_v0  ;;  %v105_v3 = vld [vmem:[#allocation12 + $0x68] sm:$0xff]  ;;  %v104_v4 = vld [vmem:[#allocation12 + $0x60] sm:$0xff]  ;;  %v103_v5 = vld [vmem:[#allocation12 + $0x58] sm:$0xff]  ;;  %s476_s2 = smov [#allocation14]  }
  0x3f   :  { %268 = vmatpush3.msra.mxu0 %v107_v1  ;;  %v102_v6 = vld [vmem:[#allocation12 + $0x50] sm:$0xff]  ;;  %v101_v7 = vld [vmem:[#allocation12 + $0x48] sm:$0xff]  ;;  %v100_v8 = vld [vmem:[#allocation12 + $0x40] sm:$0xff]  ;;  %v109_v23 = vand.u32 127, %v108_v22  ;;  %s235_s4 = sshll.u32 %s476_s2, 4  ;;  %s236_s4 = int_to_ptr.vmem [resolvable:$true] %s235_s4 }
  0x40   :  { %269 = vmatprep.subr.mxu0 %v474_v0  ;;  %v99_v9 = vld [vmem:[#allocation12 + $0x38] sm:$0xff]  ;;  %v98_v10 = vld [vmem:[#allocation12 + $0x30] sm:$0xff]  ;;  %v97_v11 = vld [vmem:[#allocation12 + $0x28] sm:$0xff]  ;;  %s417_s21 = scalar_lea.vmem %s236_s4, 128  ;;  %p422_p12 = scmp.lt.s32.totalorder %s236_s4, %s236_s4 }
  0x41   :  { %270 = vmatpush3.msra.mxu0 %v106_v2  ;;  %v96_v12 = vld [vmem:[#allocation12 + $0x20] sm:$0xff]  ;;  %v95_v13 = vld [vmem:[#allocation12 + $0x18] sm:$0xff]  ;;  %v94_v14 = vld [vmem:[#allocation12 + $0x10] sm:$0xff]  ;;  %vm110_vm1 = vcmp.lt.s32.totalorder %v109_v23, 32  ;;  %p418_p11 = scmp.ne.s32.totalorder %s236_s4, %s417_s21  ;;  %p423_p13 = scmp.lt.s32.totalorder %s417_s21, %s417_s21 }
  0x42   :  { %271 = vmatprep.subr.mxu0 %v474_v0  ;;  %v93_v15 = vld [vmem:[#allocation12 + $0x8] sm:$0xff]  ;;  %v92_v16 = vld [vmem:[#allocation12] sm:$0xff]  ;;  %v88_v17 = vld [vmem:[#allocation9] sm:$0xff] }
  0x43   :  { %272 = vmatpush3.msra.mxu0 %v105_v3  ;;  %v111_v18 = vld [vmem:[#allocation4] sm:$0xff]  ;;  %v90_v29 = vld [vmem:[#allocation10] sm:$0xff]  ;;  %v208_v30 = vmul.f32 0.25, %v88_v17  ;;  %p424_p0 = por %p423_p13, %p422_p12 }
  0x44   :  { %273 = vmatprep.subr.mxu0 %v474_v0  ;;  %v207_v31 = vmul.f32 0.75, %v90_v29 }
  0x45   :  { %274 = vmatpush3.msra.mxu0 %v104_v4  ;;  %p425_p1 = pnand %p424_p0, %p418_p11 }
  0x46   :  { %275 = vmatprep.subr.mxu0 %v474_v0  ;;  %v209_v32 = vadd.f32 %v208_v30, %v207_v31 }
  0x47   :  { %276 = vmatpush3.msra.mxu0 %v103_v5 }
  0x48   :  { %277 = vmatprep.subr.mxu0 %v474_v0  ;;  %218 = vst [vmem:[#allocation14] sm:$0xff] %v209_v32 }
  0x49   :  { %278 = vmatpush3.msra.mxu0 %v102_v6 }
  0x4a   :  { %279 = vmatprep.subr.mxu0 %v474_v0 }
  0x4b   :  { %280 = vmatpush3.msra.mxu0 %v101_v7 }
  0x4c   :  { %281 = vmatprep.subr.mxu0 %v474_v0 }
  0x4d   :  { %282 = vmatpush3.msra.mxu0 %v100_v8 }
  0x4e   :  { %283 = vmatprep.subr.mxu0 %v474_v0 }
  0x4f   :  { %284 = vmatpush3.msra.mxu0 %v99_v9 }
  0x50   :  { %285 = vmatprep.subr.mxu0 %v474_v0 }
  0x51   :  { %286 = vmatpush3.msra.mxu0 %v98_v10 }
  0x52   :  { %287 = vmatprep.subr.mxu0 %v474_v0 }
  0x53   :  { %288 = vmatpush3.msra.mxu0 %v97_v11 }
  0x54   :  { %289 = vmatprep.subr.mxu0 %v474_v0 }
  0x55   :  { %290 = vmatpush3.msra.mxu0 %v96_v12 }
  0x56   :  { %291 = vmatprep.subr.mxu0 %v474_v0 }
  0x57   :  { %292 = vmatpush3.msra.mxu0 %v95_v13 }
  0x58   :  { %293 = vmatprep.subr.mxu0 %v474_v0 }
  0x59   :  { %294 = vmatpush3.msra.mxu0 %v94_v14 }
  0x5a   :  { %295 = vmatprep.subr.mxu0 %v474_v0 }
  0x5b   :  { %296 = vmatpush3.msra.mxu0 %v93_v15 }
  0x5c   :  { %297 = vmatprep.subr.mxu0 %v474_v0 }
  0x5d   :  { %298 = vmatpush3.msra.mxu0 %v92_v16 }
  0x5e   :  { %300 = vmatmul.mubr.f32.vlgmr.msra.gmra.mxu0 %v88_v17 }
 0x11e   :  { %v180_v19 = vpop.f32.mrf.mxu0 }
 0x11f   :  { %v184_v20 = vadd.f32 %v180_v19, %v111_v18 }
 0x120   :  { %v301_v21 = vpop.f32.mrf.mxu0 }
 0x121   :  { %185 = vadd.xlane.f32.xlu0 %v184_v20 }
 0x1aa   :  { %v186_v24 = vpop.xlane.xlu0 %185 }
 0x1ab   :  { %v187_v25 = vmul.f32 0.03125, %v186_v24 }
 0x1ad   :  { %v188_v26 = vsub.f32 %v184_v20, %v187_v25 }
 0x1af   :  { %v191_v27 = vsel %vm110_vm1, %v188_v26, 0.0 }
 0x1b0   :  { %v192_v28 = vmul.f32 %v191_v27, %v191_v27 }
 0x1b2   :  { %193 = vadd.xlane.f32.xlu0 %v192_v28 }
 0x1b3   :  { %428 = shalt.err (!%p425_p1)
}
 0x1b4   :  { %238 = dma.vmem_to_hbm [thread:$0]  %s236_s4, 128, %s542_s6, [#allocation15]   ;;  %v210_v42 = vld [vmem:[#allocation7] sm:$0xff] }
 0x1b5   :  { %s477_s24 = smov [#allocation13]  }
 0x1b6   :  { %s225_s25 = sshll.u32 %s477_s24, 4  ;;  %s226_s25 = int_to_ptr.vmem [resolvable:$true] %s225_s25 }
 0x1b7   :  { %s437_s6 = scalar_lea.vmem %s226_s25, 128  ;;  %p442_p3 = scmp.lt.s32.totalorder %s226_s25, %s226_s25 }
 0x1b8   :  { %p438_p2 = scmp.ne.s32.totalorder %s226_s25, %s437_s6  ;;  %p443_p4 = scmp.lt.s32.totalorder %s437_s6, %s437_s6 }
 0x1ba   :  { %p444_p5 = por %p443_p4, %p442_p3 }
 0x1bc   :  { %p445_p6 = pnand %p444_p5, %p438_p2 }
 0x23b   :  { %v194_v33 = vpop.xlane.xlu0 %193 }
 0x23c   :  { %v195_v34 = vmul.f32 0.03125, %v194_v33 }
 0x23e   :  { %313 = vrsqrt.f32 %v195_v34  ;;  %vm198_vm2 = vcmp.eq.f32.partialorder %v195_v34, inf  ;;  %v201_v37 = vand.u32 2147483648, %v195_v34  ;;  %vm200_vm3 = vcmp.eq.f32.partialorder %v195_v34, 0.0 }
 0x24b   :  { %v314_v35 = vpop.eup %313 }
 0x24c   :  { %v197_v36 = vmul.f32 %v314_v35, %v195_v34 }
 0x24e   :  { %v199_v38 = vsel %vm198_vm2, %v195_v34, %v197_v36 }
 0x24f   :  { %v202_v39 = vsel %vm200_vm3, %v201_v37, %v199_v38 }
 0x250   :  { %v203_v40 = vadd.f32 0.0001, %v202_v39 }
 0x252   :  { %315 = vrcp.f32 %v203_v40 }
 0x25f   :  { %v316_v41 = vpop.eup %315 }
 0x260   :  { %v205_v43 = vmul.f32 %v316_v41, %v188_v26 }
 0x262   :  { %v211_v44 = vadd.f32 %v210_v42, %v205_v43 }
 0x264   :  { %v212_v45 = vsub.f32 %v211_v44, %v90_v29 }
 0x266   :  { %v213_v46 = vmax.f32 %v212_v45, 0.0 }
 0x268   :  { %v214_v47 = vsel %vm110_vm1, %v213_v46, 0.0 }
 0x269   :  { %217 = vst [vmem:[#allocation13] sm:$0xff] %v214_v47 }
 0x26a   :  { %448 = shalt.err (!%p445_p6)
}
 0x26b   :  { %228 = dma.vmem_to_hbm [thread:$0]  %s226_s25, 128, %s541_s5, [#allocation6]  }
 0x26c   :  { %463 = dma.done.wait [#allocation6], 128  }
 0x26d   :  { %464 = vsyncadd [#allocation6], 4294967168 }
 0x26e   :  { %465 = dma.done.wait [#allocation15], 128  }
 0x26f   :  { %466 = vsyncadd [#allocation15], 4294967168 }
 0x270   :  { %245 = vsyncpa [#allocation5], 1 }
 0x271   :  { %246 = vsyncpa [#allocation8], 1 }
 0x272   :  { %247 = vsyncpa [#allocation11], 1 }
 0x273   :  { %248 = vsyncpa [#allocation6], 1 }
 0x274   :  { %249 = vsyncpa [#allocation15], 1 }

</bundles_post_ra>
